<compile_context>
chip_gen: v6e
topology: v6e:2x2x1
jax: 0.10.0
libtpu: 0.0.40
codegen_flags: <defaults>
</compile_context>

<pallas_src>
from functools import partial

import numpy as np
import jax
import jax.numpy as jnp
from jax.experimental import pallas as pl
from jax.experimental.pallas import tpu as pltpu

# --- config (mirrors ctpn config; deterministic, in-script) -------------------
RPN_TOTAL_NUM = 300
OHEM = True  # CTPN default config uses OHEM; both branches are implemented.

_LANE = 128
_BLOCK_ROWS = 1024        # 1024 * 128 anchors per grid step (~0.64 MiB inputs)
_STAT_ROWS = 8            # f32 sublane quantum for the stats slab
_NEG_SENTINEL = -1e30     # plain python float -> inlined literal, not a captured const
_CHUNK = 4096             # element chunk for the exact two-stage top-k


def _round_up(x, m):
    return ((x + m - 1) // m) * m


# --- kernels -------------------------------------------------------------------
def _ohem_kernel(d_ref, t_ref, negloss_ref, stats_ref):
    d = d_ref[...]                          # (br, 128) f32 : logit1 - logit0
    t = t_ref[...].astype(jnp.int32)        # (br, 128) labels {-1,0,1}; padding = -1
    pos = t == 1
    neg = t == 0

    # 2-class cross-entropy closed form: ce = softplus(other - chosen),
    # stable: max(x, 0) + log(1 + exp(-|x|))  -> single exp + single log (EUP).
    x = jnp.where(pos, -d, d)
    ce = jnp.maximum(x, 0.0) + jnp.log(1.0 + jnp.exp(-jnp.abs(x)))

    # Negatives-only loss, pre-masked for the wrapper-side top-k; ignored /
    # padded anchors carry a large negative sentinel.
    negloss_ref[...] = jnp.where(neg, ce, _NEG_SENTINEL)

    pos_f = pos.astype(jnp.float32)
    neg_f = neg.astype(jnp.float32)

    # One unmasked (8,128) store of per-lane partial sums (sublane-axis reduce);
    # the final 128-lane reduce happens in the wrapper.
    stats_ref[...] = jnp.concatenate(
        [jnp.sum(ce * pos_f, axis=0, keepdims=True),   # row 0: sum CE (pos)
         jnp.sum(pos_f, axis=0, keepdims=True),        # row 1: # pos
         jnp.sum(neg_f, axis=0, keepdims=True),        # row 2: # neg
         jnp.zeros((_STAT_ROWS - 3, d.shape[1]), jnp.float32)],
        axis=0)


def _plain_kernel(d_ref, t_ref, stats_ref):
    d = d_ref[...]
    t = t_ref[...].astype(jnp.int32)
    pos = t == 1
    valid = t != -1

    x = jnp.where(pos, -d, d)
    ce = jnp.maximum(x, 0.0) + jnp.log(1.0 + jnp.exp(-jnp.abs(x)))

    valid_f = valid.astype(jnp.float32)
    stats_ref[...] = jnp.concatenate(
        [jnp.sum(ce * valid_f, axis=0, keepdims=True),  # row 0: sum CE (valid)
         jnp.sum(valid_f, axis=0, keepdims=True),       # row 1: # valid
         jnp.zeros((_STAT_ROWS - 2, d.shape[1]), jnp.float32)],
        axis=0)


# --- packing & pallas_call ------------------------------------------------------
def _pack(x, t):
    """Repack (1,N,2) logits + (1,1,N) labels into lane-dense (Rp,128) arrays:
    d = logit1 - logit0 (f32) and int8 labels (padding label = -1)."""
    N = x.shape[1]
    R = max(1, -(-N // _LANE))
    if R <= _BLOCK_ROWS:
        br = _round_up(R, 32)     # 32 sublanes: legal tile for both f32 and int8
        Rp = br
    else:
        br = _BLOCK_ROWS
        Rp = _round_up(R, br)
    Np = Rp * _LANE
    d = jnp.pad(x[0, :, 1] - x[0, :, 0], (0, Np - N)).reshape(Rp, _LANE)
    lbl = jnp.pad(t[0, 0].astype(jnp.int8), (0, Np - N),
                  constant_values=-1).reshape(Rp, _LANE)
    return d, lbl, br, Rp, Np


def _run_kernel(d, lbl, br, ohem):
    Rp, lane = d.shape
    num_tiles = Rp // br
    in_specs = [pl.BlockSpec((br, lane), lambda i: (i, 0)),
                pl.BlockSpec((br, lane), lambda i: (i, 0))]
    stats_spec = pl.BlockSpec((_STAT_ROWS, lane), lambda i: (i, 0))
    stats_shape = jax.ShapeDtypeStruct((num_tiles * _STAT_ROWS, lane), jnp.float32)
    if ohem:
        kernel = _ohem_kernel
        out_shape = (jax.ShapeDtypeStruct((Rp, lane), jnp.float32), stats_shape)
        out_specs = (pl.BlockSpec((br, lane), lambda i: (i, 0)), stats_spec)
    else:
        kernel = _plain_kernel
        out_shape = stats_shape
        out_specs = stats_spec
    return pl.pallas_call(
        kernel,
        out_shape=out_shape,
        grid=(num_tiles,),
        in_specs=in_specs,
        out_specs=out_specs,
        compiler_params=pltpu.CompilerParams(
            dimension_semantics=("parallel",),
            allow_input_fusion=[True, True]),
    )(d, lbl)


@partial(jax.jit, static_argnames=("ohem",))
def rpn_cls_loss(input_data, target, ohem=OHEM):
    """JAX/Pallas equivalent of RPN_CLS_Loss.forward.

    input_data : (1, N, 2) float  -- logits
    target     : (1, 1, N) float  -- labels in {-1, 0, 1}
    """
    x = jnp.asarray(input_data, jnp.float32)
    t = jnp.asarray(target, jnp.float32)
    d, lbl, br, Rp, Np = _pack(x, t)
    num_tiles = Rp // br

    if ohem:
        negloss, stats = _run_kernel(d, lbl, br, ohem=True)
        totals = jnp.sum(stats.reshape(num_tiles, _STAT_ROWS, _LANE), axis=(0, 2))
        sum_pos, num_pos, num_neg = totals[0], totals[1], totals[2]

        # TODO(synk): exact dynamic top-k has no clean single Pallas TPU primitive;
        # the kernel pre-masks negatives and XLA's top_k does the selection.
        K = int(min(Np, RPN_TOTAL_NUM))          # static upper bound on k
        flat = negloss.reshape(-1)
        if Np > _CHUNK and K <= _CHUNK:
            # exact two-stage top-k: per-chunk top-K candidates, then global top-K
            cand = jax.lax.top_k(flat.reshape(Np // _CHUNK, _CHUNK), K)[0].reshape(-1)
            topk_vals = jax.lax.top_k(cand, K)[0]
        else:
            topk_vals = jax.lax.top_k(flat, K)[0]

        # Note: if num_pos > RPN_TOTAL_NUM the PyTorch reference would error on a
        # negative k; here the top-k contribution silently becomes 0.
        k_dyn = jnp.minimum(num_neg, RPN_TOTAL_NUM - num_pos)
        idx = jnp.arange(K, dtype=jnp.float32)
        topk_sum = jnp.sum(jnp.where(idx < k_dyn, topk_vals, 0.0))
        return (sum_pos + topk_sum) / float(RPN_TOTAL_NUM)
    else:
        stats = _run_kernel(d, lbl, br, ohem=False)
        totals = jnp.sum(stats.reshape(num_tiles, _STAT_ROWS, _LANE), axis=(0, 2))
        sum_valid, cnt_valid = totals[0], totals[1]
        mean = jnp.where(cnt_valid > 0, sum_valid / jnp.maximum(cnt_valid, 1.0), 0.0)
        return jnp.clip(mean, 0.0, 10.0)


# --- pure-numpy reference (mirrors the PyTorch forward) ------------------------
def _reference(input_data, target, ohem):
    x = np.asarray(input_data, np.float32)
    gt = np.asarray(target, np.float32)[0, 0]
    logits = x[0]
    m = logits.max(-1, keepdims=True)
    logp = logits - m - np.log(np.exp(logits - m).sum(-1, keepdims=True))
    if ohem:
        num_pos = 0
        loss_pos_sum = 0.0
        pos = np.nonzero(gt == 1)[0]
        if pos.size:
            lp = -logp[pos, 1]
            loss_pos_sum = lp.sum()
            num_pos = lp.size
        neg = np.nonzero(gt == 0)[0]
        ln = -logp[neg, 0]
        k = min(ln.size, RPN_TOTAL_NUM - num_pos)
        topk = np.sort(ln)[::-1][:k]
        return float((loss_pos_sum + topk.sum()) / RPN_TOTAL_NUM)
    else:
        keep = gt != -1
        if not keep.any():
            return 0.0
        cls_true = gt[keep].astype(np.int64)
        ce = -logp[keep, cls_true]
        return float(np.clip(ce.mean(), 0.0, 10.0))


if __name__ == "__main__":
    key = jax.random.PRNGKey(0)
    k_x, k_t = jax.random.split(key)

    N = 200
    input_data = jax.random.normal(k_x, (1, N, 2), dtype=jnp.float32)
    # labels in {-1, 0, 1}
    labels = jax.random.randint(k_t, (1, 1, N), 0, 3).astype(jnp.float32) - 1.0

    # OHEM branch (CTPN default config)
    out_ohem = jax.block_until_ready(rpn_cls_loss(input_data, labels, ohem=True))
    ref_ohem = _reference(np.asarray(input_data), np.asarray(labels), ohem=True)
    assert np.allclose(np.asarray(out_ohem), ref_ohem, rtol=1e-5, atol=1e-5), (
        out_ohem, ref_ohem)

    # non-OHEM branch
    out_plain = jax.block_until_ready(rpn_cls_loss(input_data, labels, ohem=False))
    ref_plain = _reference(np.asarray(input_data), np.asarray(labels), ohem=False)
    assert np.allclose(np.asarray(out_plain), ref_plain, rtol=1e-5, atol=1e-5), (
        out_plain, ref_plain)

    print("KERNEL_OK")
</pallas_src>

<mosaic_0001>
module attributes {stable_mosaic.version = 11 : i64} {
  func.func @_ohem_kernel(%arg0: i32, %arg1: memref<32x128xf32, #tpu.memory_space<vmem>>, %arg2: memref<32x128xi8, #tpu.memory_space<vmem>>, %arg3: memref<32x128xf32, #tpu.memory_space<vmem>>, %arg4: memref<8x128xf32, #tpu.memory_space<vmem>>) attributes {dimension_semantics = [#tpu.dimension_semantics<parallel>], iteration_bounds = array<i64: 1>, scalar_prefetch = 0 : i64, scratch_operands = 0 : i64, tpu.core_type = #tpu.core_type<tc>, window_params = [{transform_indices = @transform_0, window_bounds = array<i64: 32, 128>}, {transform_indices = @transform_1, window_bounds = array<i64: 32, 128>}, {transform_indices = @transform_2, window_bounds = array<i64: 32, 128>}, {transform_indices = @transform_3, window_bounds = array<i64: 8, 128>}]} {
    %c0 = arith.constant 0 : index
    %c0_0 = arith.constant 0 : index
    %0 = vector.load %arg1[%c0, %c0_0] : memref<32x128xf32, #tpu.memory_space<vmem>>, vector<32x128xf32>
    %c0_1 = arith.constant 0 : index
    %c0_2 = arith.constant 0 : index
    %1 = vector.load %arg2[%c0_1, %c0_2] : memref<32x128xi8, #tpu.memory_space<vmem>>, vector<32x128xi8>
    %2 = arith.extsi %1 : vector<32x128xi8> to vector<32x128xi32>
    %c1_i32 = arith.constant 1 : i32
    %3 = vector.broadcast %c1_i32 : i32 to vector<32x128xi32>
    %4 = arith.cmpi eq, %2, %3 : vector<32x128xi32>
    %c0_i32 = arith.constant 0 : i32
    %5 = vector.broadcast %c0_i32 : i32 to vector<32x128xi32>
    %6 = arith.cmpi eq, %2, %5 : vector<32x128xi32>
    %cst = arith.constant 0.000000e+00 : f32
    %7 = vector.broadcast %cst : f32 to vector<32x128xf32>
    %8 = arith.subf %7, %0 : vector<32x128xf32>
    %9 = arith.select %4, %8, %0 : vector<32x128xi1>, vector<32x128xf32>
    %cst_3 = arith.constant 0.000000e+00 : f32
    %10 = vector.broadcast %cst_3 : f32 to vector<32x128xf32>
    %11 = arith.maximumf %9, %10 : vector<32x128xf32>
    %12 = math.absf %9 : vector<32x128xf32>
    %cst_4 = arith.constant 0.000000e+00 : f32
    %13 = vector.broadcast %cst_4 : f32 to vector<32x128xf32>
    %14 = arith.subf %13, %12 : vector<32x128xf32>
    %15 = math.exp %14 : vector<32x128xf32>
    %cst_5 = arith.constant 1.000000e+00 : f32
    %16 = vector.broadcast %cst_5 : f32 to vector<32x128xf32>
    %17 = arith.addf %16, %15 : vector<32x128xf32>
    %18 = math.log %17 : vector<32x128xf32>
    %19 = arith.addf %11, %18 : vector<32x128xf32>
    %cst_6 = arith.constant -1.000000e+30 : f32
    %20 = vector.broadcast %cst_6 : f32 to vector<32x128xf32>
    %21 = arith.select %6, %19, %20 : vector<32x128xi1>, vector<32x128xf32>
    %c0_7 = arith.constant 0 : index
    %c0_8 = arith.constant 0 : index
    %22 = vector.load %arg3[%c0_7, %c0_8] : memref<32x128xf32, #tpu.memory_space<vmem>>, vector<32x128xf32>
    tpu.vector_store %arg3[%c0_7, %c0_8], %21 {strides = array<i32>} : memref<32x128xf32, #tpu.memory_space<vmem>>, vector<32x128xf32>,
    %23 = arith.extui %4 : vector<32x128xi1> to vector<32x128xi32>
    %24 = arith.sitofp %23 : vector<32x128xi32> to vector<32x128xf32>
    %25 = arith.extui %6 : vector<32x128xi1> to vector<32x128xi32>
    %26 = arith.sitofp %25 : vector<32x128xi32> to vector<32x128xf32>
    %27 = arith.mulf %19, %24 : vector<32x128xf32>
    %cst_9 = arith.constant dense<0.000000e+00> : vector<128xf32>
    %28 = vector.multi_reduction <add>, %27, %cst_9 [0] : vector<32x128xf32> to vector<128xf32>
    %29 = vector.shape_cast %28 : vector<128xf32> to vector<1x128xf32>
    %cst_10 = arith.constant dense<0.000000e+00> : vector<128xf32>
    %30 = vector.multi_reduction <add>, %24, %cst_10 [0] : vector<32x128xf32> to vector<128xf32>
    %31 = vector.shape_cast %30 : vector<128xf32> to vector<1x128xf32>
    %cst_11 = arith.constant dense<0.000000e+00> : vector<128xf32>
    %32 = vector.multi_reduction <add>, %26, %cst_11 [0] : vector<32x128xf32> to vector<128xf32>
    %33 = vector.shape_cast %32 : vector<128xf32> to vector<1x128xf32>
    %cst_12 = arith.constant 0.000000e+00 : f32
    %34 = vector.broadcast %cst_12 : f32 to vector<5x128xf32>
    %35 = tpu.concatenate %29, %31, %33, %34 in 0 : vector<1x128xf32>, vector<1x128xf32>, vector<1x128xf32>, vector<5x128xf32> -> vector<8x128xf32>
    %c0_13 = arith.constant 0 : index
    %c0_14 = arith.constant 0 : index
    %36 = vector.load %arg4[%c0_13, %c0_14] : memref<8x128xf32, #tpu.memory_space<vmem>>, vector<8x128xf32>
    tpu.vector_store %arg4[%c0_13, %c0_14], %35 {strides = array<i32>} : memref<8x128xf32, #tpu.memory_space<vmem>>, vector<8x128xf32>,
    return
  }
  func.func @transform_0(%arg0: i32) -> (i32, i32) {
    %c0_i32 = arith.constant 0 : i32
    %c0_i32_0 = arith.constant 0 : i32
    return %arg0, %c0_i32 : i32, i32
  }
  func.func @transform_1(%arg0: i32) -> (i32, i32) {
    %c0_i32 = arith.constant 0 : i32
    %c0_i32_0 = arith.constant 0 : i32
    return %arg0, %c0_i32 : i32, i32
  }
  func.func @transform_2(%arg0: i32) -> (i32, i32) {
    %c0_i32 = arith.constant 0 : i32
    %c0_i32_0 = arith.constant 0 : i32
    return %arg0, %c0_i32 : i32, i32
  }
  func.func @transform_3(%arg0: i32) -> (i32, i32) {
    %c0_i32 = arith.constant 0 : i32
    %c0_i32_0 = arith.constant 0 : i32
    return %arg0, %c0_i32 : i32, i32
  }
}

</mosaic_0001>

<bundles_post_ra>
// kernel: rpn_cls_loss.2
= control target key start
LH: loop header
LB: loop body
LE: loop exit
PB: predicated region body
PF: predicated region fallthrough
CT: control target
= control target key end

     0   :  { %s383_s0 = inlined_call_operand.vmem [shape: f32[200], index: 0, kind: input, shape index: {}]   ;;  %s384_s1 = inlined_call_operand.<no memory space> [shape: f32[], index: 1, kind: input, shape index: {}]   ;;  %s385_s2 = inlined_call_operand.vmem [shape: s8[200], index: 2, kind: input, shape index: {}]   ;;  %s386_s3 = inlined_call_operand.<no memory space> [shape: s8[], index: 3, kind: input, shape index: {}]   ;;  %s387_s4 = inlined_call_operand.vmem [shape: f32[32,128], index: 4, kind: output, shape index: {0}]   ;;  %s388_s5 = inlined_call_operand.vmem [shape: f32[8,128], index: 5, kind: output, shape index: {1}]  }
   0x1   :  { %v11_v0 = vstv %s384_s1  ;;  %v12_v1 = vstv %s386_s3 }
   0x2   :  { %v14_v2 = vshll.u32 %v12_v1, 24 }
   0x4   :  { %v15_v3 = vshra.s32 %v14_v2, 24 }
   0x5   :  { %v21_v4 = vlaneseq  ;;  %v43_v5 = vld [vmem:[%s385_s2] ss:$0 sm:$0x1]  ;;  %v244_v7 = vmov 0   ;;  %v96_v17 = vsub.f32 0.0, %v11_v0  ;;  %v245_v52 = vmov 0.0  }
   0x6   :  { %v44_v6 = vunpack.c.0.s8 %v43_v5  ;;  %v60_v8 = vpack.c.b16 %v244_v7, %v15_v3  ;;  %v20_v13 = vld [vmem:[%s383_s0] sm:$0x3]  ;;  %vm194_vm9 = vcmask 1040384   ;;  %vm196_vm10 = vcmask 1041408  }
   0x7   :  { %vm23_vm0 = vcmp.lt.s32.totalorder %v21_v4, 200  ;;  %vm198_vm11 = vcmask 1042432  }
   0x8   :  { %v51_v9 = vsel %vm23_vm0, %v44_v6, %v15_v3  ;;  %v61_v10 = vpack.c.b8 %v244_v7, %v60_v8  ;;  %v24_v14 = vsel %vm23_vm0, %v20_v13, %v11_v0 }
   0x9   :  { %v54_v11 = vpack.c.b16 %v244_v7, %v51_v9  ;;  %v95_v16 = vsub.f32 0.0, %v24_v14 }
   0xa   :  { %62 = vst [vmem:[#allocation13 + $0x2] sm:$0x3] %v61_v10  ;;  %68 = vst [vmem:[#allocation13 + $0x4] sm:$0x3] %v61_v10 }
   0xb   :  { %74 = vst [vmem:[#allocation13 + $0x6] sm:$0x3] %v61_v10  ;;  %v55_v12 = vpack.c.b8 %v244_v7, %v54_v11 }
   0xd   :  { %56 = vst [vmem:[#allocation13] sm:$0x3] %v55_v12 }
  0x14   :  { %v218_v15 = vld [vmem:[#allocation13] sm:$0xff]  }
  0x15   :  { %v219_v18 = vunpack.c.0.s8 %v218_v15  ;;  %v220_v19 = vunpack.c.1.s8 %v218_v15  ;;  %v223_v20 = vunpack.c.2.s8 %v218_v15  ;;  %v224_v21 = vunpack.c.3.s8 %v218_v15 }
  0x17   :  { %vm288_vm1 = vcmp.eq.s32.totalorder %v219_v18, 1  ;;  %vm292_vm2 = vcmp.eq.s32.totalorder %v220_v19, 1  ;;  %vm296_vm3 = vcmp.eq.s32.totalorder %v223_v20, 1  ;;  %vm300_vm4 = vcmp.eq.s32.totalorder %v224_v21, 1 }
  0x18   :  { %v306_v26 = vsel %vm288_vm1, %v95_v16, %v24_v14  ;;  %v310_v27 = vsel %vm292_vm2, %v96_v17, %v11_v0  ;;  %v314_v28 = vsel %vm296_vm3, %v96_v17, %v11_v0  ;;  %v318_v29 = vsel %vm300_vm4, %v96_v17, %v11_v0 }
  0x19   :  { %v107_v30 = vand.u32 2147483647, %v306_v26  ;;  %v108_v31 = vand.u32 2147483647, %v310_v27  ;;  %v109_v32 = vand.u32 2147483647, %v314_v28 }
  0x1a   :  { %v110_v33 = vand.u32 2147483647, %v318_v29  ;;  %vm324_vm5 = vcmp.eq.s32.totalorder %v219_v18, 0  ;;  %vm328_vm6 = vcmp.eq.s32.totalorder %v220_v19, 0  ;;  %vm336_vm7 = vcmp.eq.s32.totalorder %v223_v20, 0 }
  0x1b   :  { %v111_v34 = vsub.f32 0.0, %v107_v30  ;;  %v112_v35 = vsub.f32 0.0, %v108_v31  ;;  %v113_v36 = vsub.f32 0.0, %v109_v32  ;;  %v213_v53 = vsel %vm324_vm5, 1.0, %v245_v52 }
  0x1c   :  { %v114_v37 = vsub.f32 0.0, %v110_v33  ;;  %v214_v54 = vsel %vm328_vm6, 1.0, %v245_v52  ;;  %v209_v56 = vsel %vm288_vm1, 1.0, %v245_v52  ;;  %v210_v57 = vsel %vm292_vm2, 1.0, %v245_v52 }
  0x1d   :  { %v115_v38 = vmul.f32 1.442695, %v111_v34  ;;  %v117_v39 = vmul.f32 1.442695, %v112_v35  ;;  %v119_v40 = vmul.f32 1.442695, %v113_v36  ;;  %v176_v58 = vadd.f32 %v210_v57, %v209_v56 }
  0x1e   :  { %v121_v41 = vmul.f32 1.442695, %v114_v37  ;;  %v185_v59 = vadd.f32 %v214_v54, %v213_v53  ;;  %v215_v60 = vsel %vm336_vm7, 1.0, %v245_v52  ;;  %vm346_vm8 = vcmp.eq.s32.totalorder %v224_v21, 0 }
  0x1f   :  { %228 = vpow2.f32 %v115_v38  ;;  %v211_v62 = vsel %vm296_vm3, 1.0, %v245_v52  ;;  %v216_v1 = vsel %vm346_vm8, 1.0, %v245_v52  ;;  %v212_v2 = vsel %vm300_vm4, 1.0, %v245_v52 }
  0x20   :  { %230 = vpow2.f32 %v117_v39  ;;  %v177_v63 = vadd.f32 %v211_v62, %v176_v58  ;;  %v186_v0 = vadd.f32 %v215_v60, %v185_v59  ;;  %v103_v4 = vmax.f32 %v306_v26, 0.0 }
  0x21   :  { %232 = vpow2.f32 %v119_v40  ;;  %v104_v7 = vmax.f32 %v310_v27, 0.0  ;;  %v105_v9 = vmax.f32 %v314_v28, 0.0  ;;  %v106_v12 = vmax.f32 %v318_v29, 0.0 }
  0x22   :  { %234 = vpow2.f32 %v121_v41  ;;  %v178_v3 = vadd.f32 %v212_v2, %v177_v63  ;;  %v187_v5 = vadd.f32 %v216_v1, %v186_v0 }
  0x24   :  { %v179_v14 = vrot.slane %v178_v3, 4  ;;  %v188_v18 = vrot.slane %v187_v5, 4 }
  0x26   :  { %v180_v27 = vadd.f32 %v179_v14, %v178_v3  ;;  %v189_v30 = vadd.f32 %v188_v18, %v187_v5 }
  0x28   :  { %v181_v35 = vrot.slane %v180_v27, 2  ;;  %v190_v36 = vrot.slane %v189_v30, 2 }
  0x2a   :  { %v182_v39 = vadd.f32 %v181_v35, %v180_v27  ;;  %v191_v40 = vadd.f32 %v190_v36, %v189_v30 }
  0x2c   :  { %v229_v42 = vpop.eup %228  ;;  %v192_v44 = vrot.slane %v191_v40, 1 }
  0x2d   :  { %v231_v43 = vpop.eup %230  ;;  %v123_v46 = vadd.f32 1.0, %v229_v42 }
  0x2e   :  { %v233_v47 = vpop.eup %232  ;;  %v124_v48 = vadd.f32 1.0, %v231_v43  ;;  %v183_v43 = vrot.slane %v182_v39, 1 }
  0x2f   :  { %v235_v49 = vpop.eup %234  ;;  %v125_v50 = vadd.f32 1.0, %v233_v47  ;;  %236 = vlog2.f32 %v123_v46 }
  0x30   :  { %v126_v51 = vadd.f32 1.0, %v235_v49  ;;  %238 = vlog2.f32 %v124_v48  ;;  %v184_v47 = vadd.f32 %v183_v43, %v182_v39  ;;  %v193_v48 = vadd.f32 %v192_v44, %v191_v40 }
  0x31   :  { %240 = vlog2.f32 %v125_v50 }
  0x32   :  { %242 = vlog2.f32 %v126_v51 }
  0x3c   :  { %v237_v6 = vpop.eup %236 }
  0x3d   :  { %v239_v8 = vpop.eup %238  ;;  %v128_v10 = vmul.f32 0.6931472, %v237_v6 }
  0x3e   :  { %v241_v11 = vpop.eup %240  ;;  %v130_v13 = vmul.f32 0.6931472, %v239_v8 }
  0x3f   :  { %v243_v15 = vpop.eup %242  ;;  %v132_v16 = vmul.f32 0.6931472, %v241_v11  ;;  %v135_v17 = vadd.f32 %v128_v10, %v103_v4 }
  0x40   :  { %v134_v19 = vmul.f32 0.6931472, %v243_v15  ;;  %v136_v20 = vadd.f32 %v130_v13, %v104_v7 }
  0x41   :  { %v137_v21 = vadd.f32 %v132_v16, %v105_v9  ;;  %v139_v22 = vsel %vm324_vm5, %v135_v17, -1e+30  ;;  %v163_v23 = vmul.f32 %v209_v56, %v135_v17 }
  0x42   :  { %v138_v24 = vadd.f32 %v134_v19, %v106_v12  ;;  %v140_v25 = vsel %vm328_vm6, %v136_v20, -1e+30  ;;  %143 = vst [vmem:[%s387_s4] sm:$0xff] %v139_v22  ;;  %v164_v26 = vmul.f32 %v210_v57, %v136_v20 }
  0x43   :  { %v141_v28 = vsel %vm336_vm7, %v137_v21, -1e+30  ;;  %144 = vst [vmem:[%s387_s4 + $0x8] sm:$0xff] %v140_v25  ;;  %v165_v29 = vmul.f32 %v211_v62, %v137_v21 }
  0x44   :  { %v142_v31 = vsel %vm346_vm8, %v138_v24, -1e+30  ;;  %145 = vst [vmem:[%s387_s4 + $0x10] sm:$0xff] %v141_v28  ;;  %v166_v32 = vmul.f32 %v212_v2, %v138_v24  ;;  %v167_v33 = vadd.f32 %v164_v26, %v163_v23 }
  0x45   :  { %146 = vst [vmem:[%s387_s4 + $0x18] sm:$0xff] %v142_v31 }
  0x46   :  { %v168_v34 = vadd.f32 %v167_v33, %v165_v29 }
  0x48   :  { %v169_v37 = vadd.f32 %v168_v34, %v166_v32 }
  0x4a   :  { %v170_v38 = vrot.slane %v169_v37, 4 }
  0x4c   :  { %v171_v41 = vadd.f32 %v170_v38, %v169_v37 }
  0x4e   :  { %v172_v42 = vrot.slane %v171_v41, 2 }
  0x50   :  { %v173_v45 = vadd.f32 %v172_v42, %v171_v41 }
  0x52   :  { %v174_v46 = vrot.slane %v173_v45, 1 }
  0x54   :  { %v175_v49 = vadd.f32 %v174_v46, %v173_v45 }
  0x56   :  { %v195_v50 = vsel %vm194_vm9, %v175_v49, %v184_v47 }
  0x57   :  { %v197_v51 = vsel %vm196_vm10, %v195_v50, %v193_v48 }
  0x58   :  { %v199_v52 = vsel %vm198_vm11, %v197_v51, 0.0 }
  0x59   :  { %200 = vst [vmem:[%s388_s5] sm:$0xff] %v199_v52 }

</bundles_post_ra>
